<compile_context>
chip_gen: v5e
topology: v5e:2x2
jax: 0.10.0
libtpu: 0.0.40
codegen_flags: <defaults>
</compile_context>

<pallas_src>
import functools

import jax
import jax.numpy as jnp
from jax.experimental import pallas as pl
from jax.experimental.pallas import tpu as pltpu


def _round_up(x, m):
    return (x + m - 1) // m * m


def _actor_critic_kernel(x_ref, w1_ref, w2_ref, w3_ref, b_ref, out_ref, *,
                         action_size):
    x = x_ref[...]                                  # (bm, S) f32

    b1 = b_ref[0:1, :]                              # (1, 256)  [ba1 | bc1]
    b2 = b_ref[1:2, :128]                           # (1, 128)  [ba2 | bc2]
    b3 = b_ref[2:3, :128]                           # (1, 128)  [ba3 | bc3 | 0...]

    # Fused layer 1: actor(128) | critic(128) side by side -> (bm, 256).
    h = jnp.dot(x, w1_ref[...], preferred_element_type=jnp.float32) + b1
    h = jnp.maximum(h, 0.0)

    # Fused layer 2 (block-diagonal): actor(64) | critic(64) -> (bm, 128).
    h = jnp.dot(h, w2_ref[...], preferred_element_type=jnp.float32) + b2
    h = jnp.maximum(h, 0.0)

    # Fused layer 3 (block-diagonal, lane-padded to 128):
    #   lanes [0, A) = actor logits, lane A = critic value, lanes (A, 128) = 0.
    y = jnp.dot(h, w3_ref[...], preferred_element_type=jnp.float32) + b3

    lane = jax.lax.broadcasted_iota(jnp.int32, y.shape, 1)
    is_logit = lane < action_size
    logits = jnp.where(is_logit, y, -jnp.inf)
    m = jnp.max(logits, axis=-1, keepdims=True)
    e = jnp.exp(logits - m)                         # masked lanes -> exp(-inf) = 0
    denom = jnp.sum(e, axis=-1, keepdims=True)
    probs = e * pl.reciprocal(denom, approx=False)

    # Lane-dense output slab: probs in [0, A), value in lane A, zeros after.
    out_ref[...] = jnp.where(lane == action_size, y, probs).astype(out_ref.dtype)


def actor_critic_forward(state, params, *, block_b=512):
    """state: (B, state_size) f32.  Returns (action_probs (B, A), state_value (B, 1))."""
    B, S = state.shape
    A = int(params["wa3"].shape[1])
    assert A + 1 <= 128, "action_size + 1 must fit in one 128-lane tile"

    # ---- host-side weight packing (fused actor|critic, block-diag 2/3) ----
    w1 = jnp.concatenate([params["wa1"], params["wc1"]], axis=1)        # (S, 256)
    w2 = jnp.zeros((256, 128), jnp.float32)
    w2 = w2.at[:128, :64].set(params["wa2"]).at[128:, 64:].set(params["wc2"])
    w3 = jnp.zeros((128, 128), jnp.float32)
    w3 = w3.at[:64, :A].set(params["wa3"]).at[64:, A].set(params["wc3"][:, 0])

    b = jnp.zeros((8, 256), jnp.float32)
    b = b.at[0, :].set(
        jnp.concatenate([params["ba1"], params["bc1"]], axis=1)[0])
    b = b.at[1, :128].set(
        jnp.concatenate([params["ba2"], params["bc2"]], axis=1)[0])
    b = b.at[2, :A].set(params["ba3"][0])
    b = b.at[2, A].set(params["bc3"][0, 0])

    # ---- batch tiling (budgeted against v7x's smaller VMEM; tiny anyway) ----
    bm = block_b
    if B < bm:
        bm = max(8, _round_up(B, 8))
    B_pad = _round_up(B, bm)
    x = state if B_pad == B else jnp.pad(state, ((0, B_pad - B), (0, 0)))

    grid = (B_pad // bm,)
    kernel = functools.partial(_actor_critic_kernel, action_size=A)

    out = pl.pallas_call(
        kernel,
        out_shape=jax.ShapeDtypeStruct((B_pad, 128), jnp.float32),
        grid=grid,
        in_specs=[
            pl.BlockSpec((bm, S), lambda i: (i, 0)),      # state tile (pipelined)
            pl.BlockSpec((S, 256), lambda i: (0, 0)),     # fused W1 (resident)
            pl.BlockSpec((256, 128), lambda i: (0, 0)),   # fused W2 (resident)
            pl.BlockSpec((128, 128), lambda i: (0, 0)),   # fused W3 (resident)
            pl.BlockSpec((8, 256), lambda i: (0, 0)),     # packed biases (resident)
        ],
        out_specs=pl.BlockSpec((bm, 128), lambda i: (i, 0)),
        compiler_params=pltpu.CompilerParams(
            dimension_semantics=("parallel",),
        ),
    )(x, w1, w2, w3, b)

    probs = out[:B, :A]
    value = out[:B, A:A + 1]
    return probs, value


def init_params(key, state_size, action_size):
    """Deterministic synthetic weights, stored as (in, out)."""
    def lin(k, fan_in, fan_out):
        kw, kb = jax.random.split(k)
        bound = 1.0 / jnp.sqrt(fan_in)
        w = jax.random.uniform(kw, (fan_in, fan_out), jnp.float32, -bound, bound)
        b = jax.random.uniform(kb, (1, fan_out), jnp.float32, -bound, bound)
        return w, b

    keys = jax.random.split(key, 6)
    wa1, ba1 = lin(keys[0], state_size, 128)
    wa2, ba2 = lin(keys[1], 128, 64)
    wa3, ba3 = lin(keys[2], 64, action_size)
    wc1, bc1 = lin(keys[3], state_size, 128)
    wc2, bc2 = lin(keys[4], 128, 64)
    wc3, bc3 = lin(keys[5], 64, 1)
    return dict(
        wa1=wa1, ba1=ba1, wa2=wa2, ba2=ba2, wa3=wa3, ba3=ba3,
        wc1=wc1, bc1=bc1, wc2=wc2, bc2=bc2, wc3=wc3, bc3=bc3,
    )


def _reference_forward(state, p):
    """Pure-JAX reference matching the PyTorch module semantics."""
    h = jnp.maximum(state @ p["wa1"] + p["ba1"], 0.0)
    h = jnp.maximum(h @ p["wa2"] + p["ba2"], 0.0)
    logits = h @ p["wa3"] + p["ba3"]
    probs = jax.nn.softmax(logits, axis=-1)

    g = jnp.maximum(state @ p["wc1"] + p["bc1"], 0.0)
    g = jnp.maximum(g @ p["wc2"] + p["bc2"], 0.0)
    value = g @ p["wc3"] + p["bc3"]
    return probs, value


if __name__ == "__main__":
    STATE_SIZE, ACTION_SIZE = 32, 4

    key = jax.random.PRNGKey(0)
    k_params, k_small, k_big = jax.random.split(key, 3)
    params = init_params(k_params, STATE_SIZE, ACTION_SIZE)

    # Small batch (single grid step, B equals the block).
    B = 8
    state = jax.random.normal(k_small, (B, STATE_SIZE), jnp.float32)
    probs, value = actor_critic_forward(state, params)
    jax.block_until_ready((probs, value))

    ref_probs, ref_value = _reference_forward(state, params)
    assert probs.shape == (B, ACTION_SIZE) and value.shape == (B, 1)
    assert jnp.allclose(probs, ref_probs, atol=1e-5, rtol=1e-5)
    assert jnp.allclose(value, ref_value, atol=1e-5, rtol=1e-5)
    assert jnp.allclose(jnp.sum(probs, axis=-1), 1.0, atol=1e-5)

    # Larger, ragged batch exercising the batch grid + padding path.
    B2 = 300
    state2 = jax.random.normal(k_big, (B2, STATE_SIZE), jnp.float32)
    probs2, value2 = actor_critic_forward(state2, params, block_b=128)
    jax.block_until_ready((probs2, value2))

    ref_probs2, ref_value2 = _reference_forward(state2, params)
    assert probs2.shape == (B2, ACTION_SIZE) and value2.shape == (B2, 1)
    assert jnp.allclose(probs2, ref_probs2, atol=1e-5, rtol=1e-5)
    assert jnp.allclose(value2, ref_value2, atol=1e-5, rtol=1e-5)
    assert jnp.allclose(jnp.sum(probs2, axis=-1), 1.0, atol=1e-5)

    print("KERNEL_OK")
</pallas_src>

<mosaic_0001>
module attributes {stable_mosaic.version = 11 : i64} {
  func.func @_actor_critic_kernel(%arg0: i32, %arg1: memref<8x32xf32, #tpu.memory_space<vmem>>, %arg2: memref<32x256xf32, #tpu.memory_space<vmem>>, %arg3: memref<256x128xf32, #tpu.memory_space<vmem>>, %arg4: memref<128x128xf32, #tpu.memory_space<vmem>>, %arg5: memref<8x256xf32, #tpu.memory_space<vmem>>, %arg6: memref<8x128xf32, #tpu.memory_space<vmem>>) attributes {dimension_semantics = [#tpu.dimension_semantics<parallel>], iteration_bounds = array<i64: 1>, scalar_prefetch = 0 : i64, scratch_operands = 0 : i64, tpu.core_type = #tpu.core_type<tc>, window_params = [{transform_indices = @transform_0, window_bounds = array<i64: 8, 32>}, {pipeline_mode = #tpu.pipeline_mode<synchronous>, transform_indices = @transform_1, window_bounds = array<i64: 32, 256>}, {pipeline_mode = #tpu.pipeline_mode<synchronous>, transform_indices = @transform_2, window_bounds = array<i64: 256, 128>}, {pipeline_mode = #tpu.pipeline_mode<synchronous>, transform_indices = @transform_3, window_bounds = array<i64: 128, 128>}, {pipeline_mode = #tpu.pipeline_mode<synchronous>, transform_indices = @transform_4, window_bounds = array<i64: 8, 256>}, {transform_indices = @transform_5, window_bounds = array<i64: 8, 128>}]} {
    %c0 = arith.constant 0 : index
    %c0_0 = arith.constant 0 : index
    %0 = vector.load %arg1[%c0, %c0_0] : memref<8x32xf32, #tpu.memory_space<vmem>>, vector<8x32xf32>
    %c0_1 = arith.constant 0 : index
    %c0_2 = arith.constant 0 : index
    %1 = vector.load %arg5[%c0_1, %c0_2] : memref<8x256xf32, #tpu.memory_space<vmem>>, vector<1x256xf32>
    %c1 = arith.constant 1 : index
    %c0_3 = arith.constant 0 : index
    %2 = vector.load %arg5[%c1, %c0_3] : memref<8x256xf32, #tpu.memory_space<vmem>>, vector<1x128xf32>
    %c2 = arith.constant 2 : index
    %c0_4 = arith.constant 0 : index
    %3 = vector.load %arg5[%c2, %c0_4] : memref<8x256xf32, #tpu.memory_space<vmem>>, vector<1x128xf32>
    %c0_5 = arith.constant 0 : index
    %c0_6 = arith.constant 0 : index
    %4 = vector.load %arg2[%c0_5, %c0_6] : memref<32x256xf32, #tpu.memory_space<vmem>>, vector<32x256xf32>
    %cst = arith.constant dense<0.000000e+00> : vector<8x256xf32>
    %5 = tpu.matmul %0, %4, %cst {dimension_numbers = #tpu.dot_dimension_numbers<[1], [0], [0], [1], [0, 0, 1, 1], [], []>} : vector<8x32xf32>, vector<32x256xf32>, vector<8x256xf32> -> vector<8x256xf32>
    %6 = vector.broadcast %1 : vector<1x256xf32> to vector<8x256xf32>
    %7 = arith.addf %5, %6 : vector<8x256xf32>
    %cst_7 = arith.constant 0.000000e+00 : f32
    %8 = vector.broadcast %cst_7 : f32 to vector<8x256xf32>
    %9 = arith.maximumf %7, %8 : vector<8x256xf32>
    %c0_8 = arith.constant 0 : index
    %c0_9 = arith.constant 0 : index
    %10 = vector.load %arg3[%c0_8, %c0_9] : memref<256x128xf32, #tpu.memory_space<vmem>>, vector<256x128xf32>
    %cst_10 = arith.constant dense<0.000000e+00> : vector<8x128xf32>
    %11 = tpu.matmul %9, %10, %cst_10 {dimension_numbers = #tpu.dot_dimension_numbers<[1], [0], [0], [1], [0, 0, 1, 1], [], []>} : vector<8x256xf32>, vector<256x128xf32>, vector<8x128xf32> -> vector<8x128xf32>
    %12 = vector.broadcast %2 : vector<1x128xf32> to vector<8x128xf32>
    %13 = arith.addf %11, %12 : vector<8x128xf32>
    %cst_11 = arith.constant 0.000000e+00 : f32
    %14 = vector.broadcast %cst_11 : f32 to vector<8x128xf32>
    %15 = arith.maximumf %13, %14 : vector<8x128xf32>
    %c0_12 = arith.constant 0 : index
    %c0_13 = arith.constant 0 : index
    %16 = vector.load %arg4[%c0_12, %c0_13] : memref<128x128xf32, #tpu.memory_space<vmem>>, vector<128x128xf32>
    %cst_14 = arith.constant dense<0.000000e+00> : vector<8x128xf32>
    %17 = tpu.matmul %15, %16, %cst_14 {dimension_numbers = #tpu.dot_dimension_numbers<[1], [0], [0], [1], [0, 0, 1, 1], [], []>} : vector<8x128xf32>, vector<128x128xf32>, vector<8x128xf32> -> vector<8x128xf32>
    %18 = vector.broadcast %3 : vector<1x128xf32> to vector<8x128xf32>
    %19 = arith.addf %17, %18 : vector<8x128xf32>
    %20 = tpu.iota {dimensions = array<i32: 1>} : vector<8x128xi32>
    %c4_i32 = arith.constant 4 : i32
    %21 = vector.broadcast %c4_i32 : i32 to vector<8x128xi32>
    %22 = arith.cmpi slt, %20, %21 : vector<8x128xi32>
    %cst_15 = arith.constant 0xFF800000 : f32
    %23 = vector.broadcast %cst_15 : f32 to vector<8x128xf32>
    %24 = arith.select %22, %19, %23 : vector<8x128xi1>, vector<8x128xf32>
    %cst_16 = arith.constant dense<0xFF800000> : vector<8xf32>
    %25 = vector.multi_reduction <maximumf>, %24, %cst_16 [1] : vector<8x128xf32> to vector<8xf32>
    %26 = vector.shape_cast %25 : vector<8xf32> to vector<8x1xf32>
    %27 = vector.broadcast %26 : vector<8x1xf32> to vector<8x128xf32>
    %28 = arith.subf %24, %27 : vector<8x128xf32>
    %29 = math.exp %28 : vector<8x128xf32>
    %cst_17 = arith.constant dense<0.000000e+00> : vector<8xf32>
    %30 = vector.multi_reduction <add>, %29, %cst_17 [1] : vector<8x128xf32> to vector<8xf32>
    %31 = vector.shape_cast %30 : vector<8xf32> to vector<8x1xf32>
    %32 = tpu.reciprocal %31 : vector<8x1xf32> -> vector<8x1xf32>
    %33 = vector.broadcast %32 : vector<8x1xf32> to vector<8x128xf32>
    %34 = arith.mulf %29, %33 : vector<8x128xf32>
    %c4_i32_18 = arith.constant 4 : i32
    %35 = vector.broadcast %c4_i32_18 : i32 to vector<8x128xi32>
    %36 = arith.cmpi eq, %20, %35 : vector<8x128xi32>
    %37 = arith.select %36, %19, %34 : vector<8x128xi1>, vector<8x128xf32>
    %c0_19 = arith.constant 0 : index
    %c0_20 = arith.constant 0 : index
    %38 = vector.load %arg6[%c0_19, %c0_20] : memref<8x128xf32, #tpu.memory_space<vmem>>, vector<8x128xf32>
    tpu.vector_store %arg6[%c0_19, %c0_20], %37 {strides = array<i32>} : memref<8x128xf32, #tpu.memory_space<vmem>>, vector<8x128xf32>,
    return
  }
  func.func @transform_0(%arg0: i32) -> (i32, i32) {
    %c0_i32 = arith.constant 0 : i32
    %c0_i32_0 = arith.constant 0 : i32
    return %arg0, %c0_i32 : i32, i32
  }
  func.func @transform_1(%arg0: i32) -> (i32, i32) {
    %c0_i32 = arith.constant 0 : i32
    %c0_i32_0 = arith.constant 0 : i32
    %c0_i32_1 = arith.constant 0 : i32
    return %c0_i32, %c0_i32_0 : i32, i32
  }
  func.func @transform_2(%arg0: i32) -> (i32, i32) {
    %c0_i32 = arith.constant 0 : i32
    %c0_i32_0 = arith.constant 0 : i32
    %c0_i32_1 = arith.constant 0 : i32
    return %c0_i32, %c0_i32_0 : i32, i32
  }
  func.func @transform_3(%arg0: i32) -> (i32, i32) {
    %c0_i32 = arith.constant 0 : i32
    %c0_i32_0 = arith.constant 0 : i32
    %c0_i32_1 = arith.constant 0 : i32
    return %c0_i32, %c0_i32_0 : i32, i32
  }
  func.func @transform_4(%arg0: i32) -> (i32, i32) {
    %c0_i32 = arith.constant 0 : i32
    %c0_i32_0 = arith.constant 0 : i32
    %c0_i32_1 = arith.constant 0 : i32
    return %c0_i32, %c0_i32_0 : i32, i32
  }
  func.func @transform_5(%arg0: i32) -> (i32, i32) {
    %c0_i32 = arith.constant 0 : i32
    %c0_i32_0 = arith.constant 0 : i32
    return %arg0, %c0_i32 : i32, i32
  }
}

</mosaic_0001>

<bundles_post_ra>
// kernel: tpu_custom_call.1
= control target key start
LH: loop header
LB: loop body
LE: loop exit
PB: predicated region body
PF: predicated region fallthrough
CT: control target
= control target key end

     0   :  { %10 = vsyncpa [#allocation3], 0  ;;  %s543_s0 = inlined_call_operand.hbm [shape: f32[8,32], index: 0, kind: input, shape index: {}]   ;;  %s544_s1 = inlined_call_operand.hbm [shape: f32[32,256], index: 1, kind: input, shape index: {}]   ;;  %s545_s2 = inlined_call_operand.hbm [shape: f32[256,128], index: 2, kind: input, shape index: {}]   ;;  %s546_s3 = inlined_call_operand.hbm [shape: f32[128,128], index: 3, kind: input, shape index: {}]   ;;  %s547_s4 = inlined_call_operand.hbm [shape: f32[8,256], index: 4, kind: input, shape index: {}]   ;;  %s548_s5 = inlined_call_operand.hbm [shape: f32[8,128], index: 5, kind: output, shape index: {}]  }
   0x1   :  { %11 = vsyncpa [#allocation6], 0 }
   0x2   :  { %12 = vsyncpa [#allocation9], 0  ;;  %s29_s20 = sshll.u32 %s544_s1, 4  ;;  %s30_s20 = int_to_ptr.hbm [resolvable:$true] %s29_s20 }
   0x3   :  { %13 = vsyncpa [#allocation4], 0  ;;  %s483_s21 = smov [#allocation5]   ;;  %s484_s23 = smov 256  }
   0x4   :  { %s31_s22 = sshll.u32 %s483_s21, 4  ;;  %s485_s24 = smov 16   ;;  %s32_s22 = int_to_ptr.vmem [resolvable:$true] %s31_s22 }
   0x5   :  { %37 = dma.hbm_to_vmem [thread:$0]  %s30_s20, 1024, %s32_s22, [#allocation6], %s484_s23, %s484_s23, %s485_s24  }
   0x6   :  { %s55_s27 = sshll.u32 %s546_s3, 4  ;;  %s486_s28 = smov [#allocation8]   ;;  %s56_s27 = int_to_ptr.hbm [resolvable:$true] %s55_s27 }
   0x7   :  { %s57_s29 = sshll.u32 %s486_s28, 4  ;;  %s19_s7 = sshll.u32 %s543_s0, 4  ;;  %s58_s29 = int_to_ptr.vmem [resolvable:$true] %s57_s29  ;;  %s20_s7 = int_to_ptr.hbm [resolvable:$true] %s19_s7 }
   0x8   :  { %s487_s1 = smov 128   ;;  %s488_s8 = smov 8  }
   0x9   :  { %63 = dma.hbm_to_vmem [thread:$0]  %s56_s27, 2048, %s58_s29, [#allocation9], %s487_s1, %s487_s1, %s488_s8  }
   0xa   :  { %s42_s11 = sshll.u32 %s545_s2, 4  ;;  %s489_s12 = smov [#allocation2]   ;;  %s43_s11 = int_to_ptr.hbm [resolvable:$true] %s42_s11 }
   0xb   :  { %s21_s13 = sshll.u32 %s489_s12, 4  ;;  %s490_s3 = smov [#allocation7]   ;;  %s22_s13 = int_to_ptr.vmem [resolvable:$true] %s21_s13 }
   0xc   :  { %24 = dma.hbm_to_vmem [thread:$0]  %s20_s7, 128, %s22_s13, [#allocation3]  }
   0xd   :  { %s44_s14 = sshll.u32 %s490_s3, 4  ;;  %s69_s0 = sshll.u32 %s547_s4, 4  ;;  %s45_s14 = int_to_ptr.vmem [resolvable:$true] %s44_s14  ;;  %s70_s0 = int_to_ptr.hbm [resolvable:$true] %s69_s0 }
   0xe   :  { %50 = dma.hbm_to_vmem [thread:$0]  %s43_s11, 4096, %s45_s14, [#allocation6], %s487_s1, %s487_s1, %s488_s8  }
   0xf   :  { %s491_s17 = smov [#allocation10]  }
  0x10   :  { %s71_s18 = sshll.u32 %s491_s17, 4  ;;  %s72_s18 = int_to_ptr.vmem [resolvable:$true] %s71_s18 }
  0x11   :  { %74 = dma.hbm_to_vmem [thread:$0]  %s70_s0, 256, %s72_s18, [#allocation9]  }
  0x12   :  { %475 = dma.done.wait [#allocation3], 128  }
  0x13   :  { %476 = vsyncadd [#allocation3], 4294967168 }
  0x14   :  { %477 = dma.done.wait [#allocation6], 5120  }
  0x15   :  { %478 = vsyncadd [#allocation6], 4294962176 }
  0x16   :  { %479 = dma.done.wait [#allocation9], 2304  }
  0x17   :  { %480 = vsyncadd [#allocation9], 4294964992  ;;  %v105_v0 = vld [vmem:[#allocation5 + $0x30] sm:$0xff]  ;;  %v103_v1 = vld [vmem:[#allocation5 + $0x20] sm:$0xff]  ;;  %vm112_vm0 = vcmask 261120   ;;  %s492_s2 = smov [#allocation11]  }
  0x18   :  { %128 = vmatpush.msra.mxu1 %v105_v0  ;;  %v101_v2 = vld [vmem:[#allocation5 + $0x10] sm:$0xff]  ;;  %v173_v3 = vld [vmem:[#allocation7 + $0x78] sm:$0xff]  ;;  %v99_v5 = vld [vmem:[#allocation5] sm:$0xff]  ;;  %s301_s4 = sshll.u32 %s492_s2, 4  ;;  %s303_s21 = sshll.u32 %s548_s5, 4  ;;  %s302_s4 = int_to_ptr.vmem [resolvable:$true] %s301_s4  ;;  %s304_s21 = int_to_ptr.hbm [resolvable:$true] %s303_s21 }
  0x19   :  { %v172_v4 = vld [vmem:[#allocation7 + $0x70] sm:$0xff]  ;;  %190 = vmatpush.msra.mxu2 %v173_v3  ;;  %v189_v6 = vld [vmem:[#allocation7 + $0xf8] sm:$0xff]  ;;  %v171_v8 = vld [vmem:[#allocation7 + $0x68] sm:$0xff] }
  0x1a   :  { %129 = vmatpush.msra.mxu1 %v103_v1  ;;  %v95_v7 = vld [vmem:[#allocation2] sm:$0xff]  ;;  %210 = vmatpush.msra.mxu3 %v189_v6  ;;  %v188_v9 = vld [vmem:[#allocation7 + $0xf0] sm:$0xff]  ;;  %v187_v11 = vld [vmem:[#allocation7 + $0xe8] sm:$0xff] }
  0x1b   :  { %v106_v10 = vld [vmem:[#allocation5 + $0x38] sm:$0xff]  ;;  %191 = vmatpush.msra.mxu2 %v172_v4  ;;  %v170_v12 = vld [vmem:[#allocation7 + $0x60] sm:$0xff]  ;;  %v104_v13 = vld [vmem:[#allocation5 + $0x28] sm:$0xff] }
  0x1c   :  { %130 = vmatpush.msra.mxu1 %v101_v2  ;;  %211 = vmatpush.msra.mxu3 %v188_v9  ;;  %v186_v14 = vld [vmem:[#allocation7 + $0xe0] sm:$0xff]  ;;  %v169_v15 = vld [vmem:[#allocation7 + $0x58] sm:$0xff]  ;;  %v168_v18 = vld [vmem:[#allocation7 + $0x50] sm:$0xff] }
  0x1d   :  { %192 = vmatpush.msra.mxu2 %v171_v8  ;;  %v102_v16 = vld [vmem:[#allocation5 + $0x18] sm:$0xff]  ;;  %v100_v19 = vld [vmem:[#allocation5 + $0x8] sm:$0xff]  ;;  %v184_v20 = vld [vmem:[#allocation7 + $0xd0] sm:$0xff]  ;;  %v267_v8 = vlaneseq }
  0x1e   :  { %131 = vmatpush.msra.mxu1 %v99_v5  ;;  %212 = vmatpush.msra.mxu3 %v187_v11  ;;  %v185_v17 = vld [vmem:[#allocation7 + $0xd8] sm:$0xff]  ;;  %v167_v21 = vld [vmem:[#allocation7 + $0x48] sm:$0xff]  ;;  %v166_v23 = vld [vmem:[#allocation7 + $0x40] sm:$0xff] }
  0x1f   :  { %315 = vmatmul.msk.f32.vlgmr.msra.gmra.mxu1 %vm112_vm0, %v95_v7  ;;  %193 = vmatpush.msra.mxu2 %v170_v12  ;;  %v183_v22 = vld [vmem:[#allocation7 + $0xc8] sm:$0xff]  ;;  %v182_v24 = vld [vmem:[#allocation7 + $0xc0] sm:$0xff]  ;;  %v165_v25 = vld [vmem:[#allocation7 + $0x38] sm:$0xff]  ;;  %v268_v9 = vand.u32 127, %v267_v8 }
  0x20   :  { %148 = vmatpush.msrb.mxu1 %v106_v10  ;;  %213 = vmatpush.msra.mxu3 %v186_v14  ;;  %v181_v26 = vld [vmem:[#allocation7 + $0xb8] sm:$0xff]  ;;  %v164_v27 = vld [vmem:[#allocation7 + $0x30] sm:$0xff]  ;;  %v163_v28 = vld [vmem:[#allocation7 + $0x28] sm:$0xff] }
  0x21   :  { %194 = vmatpush.msra.mxu2 %v169_v15  ;;  %v162_v29 = vld [vmem:[#allocation7 + $0x20] sm:$0xff]  ;;  %v161_v30 = vld [vmem:[#allocation7 + $0x18] sm:$0xff]  ;;  %v160_v31 = vld [vmem:[#allocation7 + $0x10] sm:$0xff]  ;;  %vm269_vm1 = vcmp.lt.s32.totalorder %v268_v9, 4  ;;  %vm293_vm6 = vcmp.eq.s32.totalorder %v268_v9, 4 }
  0x22   :  { %149 = vmatpush.msrb.mxu1 %v104_v13  ;;  %214 = vmatpush.msra.mxu3 %v185_v17  ;;  %v180_v32 = vld [vmem:[#allocation7 + $0xb0] sm:$0xff]  ;;  %v159_v33 = vld [vmem:[#allocation7 + $0x8] sm:$0xff]  ;;  %v158_v35 = vld [vmem:[#allocation7] sm:$0xff] }
  0x23   :  { %195 = vmatpush.msra.mxu2 %v168_v18  ;;  %v179_v34 = vld [vmem:[#allocation7 + $0xa8] sm:$0xff]  ;;  %v178_v36 = vld [vmem:[#allocation7 + $0xa0] sm:$0xff]  ;;  %v177_v37 = vld [vmem:[#allocation7 + $0x98] sm:$0xff] }
  0x24   :  { %150 = vmatpush.msrb.mxu1 %v102_v16  ;;  %215 = vmatpush.msra.mxu3 %v184_v20  ;;  %v176_v38 = vld [vmem:[#allocation7 + $0x90] sm:$0xff]  ;;  %v175_v39 = vld [vmem:[#allocation7 + $0x88] sm:$0xff]  ;;  %v174_v40 = vld [vmem:[#allocation7 + $0x80] sm:$0xff] }
  0x25   :  { %196 = vmatpush.msra.mxu2 %v167_v21  ;;  %v246_v41 = vld [vmem:[#allocation8 + $0x78] sm:$0xff]  ;;  %v245_v42 = vld [vmem:[#allocation8 + $0x70] sm:$0xff]  ;;  %v244_v43 = vld [vmem:[#allocation8 + $0x68] sm:$0xff] }
  0x26   :  { %151 = vmatpush.msrb.mxu1 %v100_v19  ;;  %216 = vmatpush.msra.mxu3 %v183_v22  ;;  %v243_v44 = vld [vmem:[#allocation8 + $0x60] sm:$0xff]  ;;  %v242_v45 = vld [vmem:[#allocation8 + $0x58] sm:$0xff]  ;;  %v241_v46 = vld [vmem:[#allocation8 + $0x50] sm:$0xff] }
  0x27   :  { %316 = vmatmul.msk.f32.vlgmr.msrb.gmra.mxu1 %vm112_vm0, %v95_v7  ;;  %197 = vmatpush.msra.mxu2 %v166_v23  ;;  %v240_v47 = vld [vmem:[#allocation8 + $0x48] sm:$0xff]  ;;  %v239_v48 = vld [vmem:[#allocation8 + $0x40] sm:$0xff]  ;;  %v238_v50 = vld [vmem:[#allocation8 + $0x38] sm:$0xff] }
  0x28   :  { %217 = vmatpush.msra.mxu3 %v182_v24  ;;  %247 = vmatpush.msra.mxu0 %v246_v41  ;;  %v96_v49 = vld [vmem:[#allocation10] ss:$8 sm:$0x3]  ;;  %v237_v59 = vld [vmem:[#allocation8 + $0x30] sm:$0xff]  ;;  %v234_v62 = vld [vmem:[#allocation8 + $0x18] sm:$0xff] }
  0x29   :  { %198 = vmatpush.msra.mxu2 %v165_v25  ;;  %v108_v51 = vperm.slane %v96_v49, 0  ;;  %v109_v55 = vperm.slane %v96_v49, 1  ;;  %v236_v60 = vld [vmem:[#allocation8 + $0x28] sm:$0xff]  ;;  %v235_v61 = vld [vmem:[#allocation8 + $0x20] sm:$0xff]  ;;  %v233_v63 = vld [vmem:[#allocation8 + $0x10] sm:$0xff] }
  0x2a   :  { %218 = vmatpush.msra.mxu3 %v181_v26  ;;  %248 = vmatpush.msra.mxu0 %v245_v42  ;;  %v232_v0 = vld [vmem:[#allocation8 + $0x8] sm:$0xff]  ;;  %v231_v1 = vld [vmem:[#allocation8] sm:$0xff] }
  0x2b   :  { %199 = vmatpush.msra.mxu2 %v164_v27  ;;  %v97_v2 = vld [vmem:[#allocation10 + $0x1] ss:$0 sm:$0xff]  ;;  %v98_v10 = vld [vmem:[#allocation10 + $0x2] ss:$0 sm:$0xff] }
  0x2c   :  { %219 = vmatpush.msra.mxu3 %v180_v32  ;;  %249 = vmatpush.msra.mxu0 %v244_v43 }
  0x2d   :  { %200 = vmatpush.msra.mxu2 %v163_v28 }
  0x2e   :  { %220 = vmatpush.msra.mxu3 %v179_v34  ;;  %250 = vmatpush.msra.mxu0 %v243_v44 }
  0x2f   :  { %201 = vmatpush.msra.mxu2 %v162_v29 }
  0x30   :  { %221 = vmatpush.msra.mxu3 %v178_v36  ;;  %251 = vmatpush.msra.mxu0 %v242_v45 }
  0x31   :  { %202 = vmatpush.msra.mxu2 %v161_v30 }
  0x32   :  { %222 = vmatpush.msra.mxu3 %v177_v37  ;;  %252 = vmatpush.msra.mxu0 %v241_v46 }
  0x33   :  { %203 = vmatpush.msra.mxu2 %v160_v31 }
  0x34   :  { %223 = vmatpush.msra.mxu3 %v176_v38  ;;  %253 = vmatpush.msra.mxu0 %v240_v47 }
  0x35   :  { %204 = vmatpush.msra.mxu2 %v159_v33 }
  0x36   :  { %224 = vmatpush.msra.mxu3 %v175_v39  ;;  %254 = vmatpush.msra.mxu0 %v239_v48 }
  0x37   :  { %205 = vmatpush.msra.mxu2 %v158_v35 }
  0x38   :  { %225 = vmatpush.msra.mxu3 %v174_v40  ;;  %255 = vmatpush.msra.mxu0 %v238_v50 }
  0x3a   :  { %256 = vmatpush.msra.mxu0 %v237_v59 }
  0x3c   :  { %257 = vmatpush.msra.mxu0 %v236_v60 }
  0x3e   :  { %258 = vmatpush.msra.mxu0 %v235_v61 }
  0x40   :  { %259 = vmatpush.msra.mxu0 %v234_v62 }
  0x42   :  { %260 = vmatpush.msra.mxu0 %v233_v63 }
  0x44   :  { %261 = vmatpush.msra.mxu0 %v232_v0 }
  0x46   :  { %262 = vmatpush.msra.mxu0 %v231_v1 }
  0x9c   :  { %v133_v52 = vpop.f32.mrf.mxu1 }
  0x9d   :  { %v134_v53 = vadd.f32 %v133_v52, %v108_v51 }
  0x9f   :  { %v156_v54 = vmax.f32 %v134_v53, 0.0 }
  0xa1   :  { %206 = vmatmul.f32.vlgmr.msra.gmra.mxu2 %v156_v54 }
  0xa4   :  { %v153_v56 = vpop.f32.mrf.mxu1 }
  0xa5   :  { %v154_v57 = vadd.f32 %v153_v56, %v109_v55 }
  0xa7   :  { %v157_v58 = vmax.f32 %v154_v57, 0.0 }
  0xa9   :  { %226 = vmatmul.f32.vlgmr.msra.gmra.mxu3 %v157_v58 }
 0x124   :  { %v207_v3 = vpop.f32.mrf.mxu2 }
 0x125   :  { %v208_v4 = vadd.f32 %v207_v3, %v97_v2 }
 0x12c   :  { %v227_v5 = vpop.f32.mrf.mxu3 }
 0x12d   :  { %v228_v6 = vadd.f32 %v227_v5, %v208_v4 }
 0x12f   :  { %v230_v7 = vmax.f32 %v228_v6, 0.0 }
 0x131   :  { %263 = vmatmul.f32.vlgmr.msra.gmra.mxu0 %v230_v7 }
 0x1ae   :  { %v264_v11 = vpop.f32.mrf.mxu0 }
 0x1af   :  { %v265_v12 = vadd.f32 %v264_v11, %v98_v10 }
 0x1b1   :  { %v270_v13 = vsel %vm269_vm1, %v265_v12, -inf }
 0x1b2   :  { %271 = vmax.xlane.f32.xlu0 %v270_v13 }
 0x225   :  { %v272_v14 = vpop.xlane.xlu0 %271 }
 0x226   :  { %v273_v15 = vsub.f32 %v270_v13, %v272_v14 }
 0x228   :  { %v274_v16 = vmul.f32 1.442695, %v273_v15 }
 0x22a   :  { %327 = vpow2.f32 %v274_v16 }
 0x230   :  { %v328_v17 = vpop.eup %327 }
 0x231   :  { %276 = vadd.xlane.f32.xlu0 %v328_v17 }
 0x2a4   :  { %v277_v18 = vpop.xlane.xlu0 %276 }
 0x2a5   :  { %329 = vrcp.f32 %v277_v18  ;;  %v289_v22 = vand.u32 2147483648, %v277_v18  ;;  %v287_v24 = vand.u32 2147483647, %v277_v18  ;;  %vm283_vm3 = vweird.f32 %v277_v18 }
 0x2a7   :  { %v290_v26 = vor.u32 1.1754944e-38, %v289_v22  ;;  %vm288_vm5 = vcmp.eq.f32.partialorder %v287_v24, 8.507059e+37 }
 0x2ab   :  { %v330_v19 = vpop.eup %329 }
 0x2ac   :  { %v279_v20 = vmul.f32 %v330_v19, %v277_v18  ;;  %vm284_vm2 = vweird.f32 %v330_v19 }
 0x2ad   :  { %vm285_vm4 = vmor %vm283_vm3, %vm284_vm2 }
 0x2ae   :  { %v280_v21 = vsub.f32 1.0, %v279_v20 }
 0x2b0   :  { %v281_v23 = vmul.f32 %v330_v19, %v280_v21 }
 0x2b2   :  { %v282_v25 = vadd.f32 %v330_v19, %v281_v23 }
 0x2b4   :  { %v286_v27 = vsel %vm285_vm4, %v330_v19, %v282_v25 }
 0x2b5   :  { %v291_v28 = vsel %vm288_vm5, %v290_v26, %v286_v27 }
 0x2b6   :  { %v292_v29 = vmul.f32 %v328_v17, %v291_v28 }
 0x2b8   :  { %v294_v30 = vsel %vm293_vm6, %v265_v12, %v292_v29 }
 0x2b9   :  { %295 = vst [vmem:[#allocation11] sm:$0xff] %v294_v30 }
 0x2ba   :  { %306 = dma.vmem_to_hbm [thread:$0]  %s302_s4, 128, %s304_s21, [#allocation4]  }
 0x2bb   :  { %481 = dma.done.wait [#allocation4], 128  }
 0x2bc   :  { %482 = vsyncadd [#allocation4], 4294967168 }
 0x2bd   :  { %311 = vsyncpa [#allocation3], 1 }
 0x2be   :  { %312 = vsyncpa [#allocation6], 1 }
 0x2bf   :  { %313 = vsyncpa [#allocation9], 1 }
 0x2c0   :  { %314 = vsyncpa [#allocation4], 1 }

</bundles_post_ra>
